<compile_context>
chip_gen: v7x
topology: tpu7x:2x2x1
jax: 0.10.0
libtpu: 0.0.40
codegen_flags: <defaults>
</compile_context>

<pallas_src>
import functools

import jax
import jax.numpy as jnp
from jax import lax
from jax.experimental import pallas as pl
from jax.experimental.pallas import tpu as pltpu


def conv_block_kernel(w_ref, shift_ref, mask_ref, x_ref, o_ref, *, img_w):
    # w_ref:     (9, Cout, Cin)  BN-scale-folded conv weights, tap-major (t = kh*3 + kw)
    # shift_ref: (Cout, 1)       fused shift = (conv_bias - running_mean) * scale + beta (f32)
    # mask_ref:  (9, 1, Mp)      per-tap boundary masks (reproduce the conv's zero padding)
    # x_ref:     (Cin, Mp)       one image, spatial flattened; Mp = H*W padded to 128-multiple
    # o_ref:     (Cout, Mp)      fused conv+BN+ReLU output, same flattened layout
    x = x_ref[...]
    mp = x.shape[-1]
    cout = o_ref.shape[0]

    acc = jnp.zeros((cout, mp), jnp.float32)
    for t in range(9):                        # statically unrolled: 9 taps of the 3x3 window
        dh, dw = t // 3 - 1, t % 3 - 1
        s = dh * img_w + dw                   # flattened source offset of this tap
        # In-kernel im2col row block for tap t: static lane-roll (XLU) + boundary mask (VPU).
        xt = x if s == 0 else pltpu.roll(x, shift=(-s) % mp, axis=1)
        if (dh, dw) != (0, 0):
            xt = xt * mask_ref[t]             # (1, Mp) sublane-broadcast; zero-fills padding
        # 9 accumulating MXU dots == one (Cout, 9*Cin) x (9*Cin, Mp) im2col matmul.
        acc = acc + jnp.dot(w_ref[t], xt.astype(w_ref.dtype),
                            preferred_element_type=jnp.float32)

    o_ref[...] = jnp.maximum(acc + shift_ref[...], 0.0).astype(o_ref.dtype)


def conv_block_forward(x_nchw, w_oihw, b, gamma, beta, run_mean, run_var,
                       eps=1e-5, compute_dtype=jnp.bfloat16):
    N, Cin, H, W = x_nchw.shape
    Cout = w_oihw.shape[0]
    M = H * W
    Mp = pl.cdiv(M, 128) * 128                # lane-dense output blocks (unmasked stores)

    # ---- Wrapper glue: free reshape of the activations + tiny per-channel folding.  No
    # im2col, no spatial padding pass, no activation/output transposes. ----
    x_flat = x_nchw.reshape(N, Cin, M)
    if Mp != M:
        x_flat = jnp.pad(x_flat, ((0, 0), (0, 0), (0, Mp - M)))

    scale = (gamma / jnp.sqrt(run_var + eps)).astype(jnp.float32)                  # (Cout,)
    w_fold = (jnp.transpose(w_oihw, (2, 3, 0, 1)).reshape(9, Cout, Cin)
              * scale[None, :, None]).astype(compute_dtype)                        # (9,Cout,Cin)
    shift = ((b - run_mean) * scale + beta).astype(jnp.float32).reshape(Cout, 1)   # (Cout, 1)

    # Per-tap boundary masks (the conv's zero padding), tap-major; tiny (9 * Mp floats).
    m_idx = jnp.arange(Mp, dtype=jnp.int32)
    w_col = m_idx % W
    tap_valid = []
    for t in range(9):
        dh, dw = t // 3 - 1, t % 3 - 1
        s = dh * W + dw
        tap_valid.append((m_idx + s >= 0) & (m_idx + s < M)
                         & (w_col + dw >= 0) & (w_col + dw < W))
    masks = jnp.stack(tap_valid).astype(jnp.float32).reshape(9, 1, Mp)

    # VMEM budget: double-buffered per-image x/out blocks + resident weights/shift/masks.
    x_blk = Cin * Mp * x_flat.dtype.itemsize
    o_blk = Cout * Mp * jnp.dtype(x_nchw.dtype).itemsize
    resident = (w_fold.size * w_fold.dtype.itemsize + shift.size * 4 + masks.size * 4)
    pipeline_bytes = 2 * (x_blk + o_blk) + 2 * resident
    assert pipeline_bytes + (8 << 20) <= 64 << 20, (
        "per-image block exceeds the VMEM budget; tile H into halo'd row bands")
    vmem_limit = int(min(64 << 20, max(32 << 20, 2 * pipeline_bytes + (4 << 20))))

    cost = pl.CostEstimate(
        flops=2 * N * M * 9 * Cin * Cout,
        transcendentals=0,
        bytes_accessed=N * (x_blk + o_blk) + resident,
    )

    kernel = functools.partial(conv_block_kernel, img_w=W)

    out = pl.pallas_call(
        kernel,
        out_shape=jax.ShapeDtypeStruct((N, Cout, Mp), x_nchw.dtype),
        grid_spec=pltpu.PrefetchScalarGridSpec(
            num_scalar_prefetch=0,
            grid=(N,),                                # one image per step; batches independent
            in_specs=[
                pl.BlockSpec((9, Cout, Cin), lambda n: (0, 0, 0)),    # resident weights
                pl.BlockSpec((Cout, 1), lambda n: (0, 0)),            # resident shift
                pl.BlockSpec((9, 1, Mp), lambda n: (0, 0, 0)),        # resident tap masks
                pl.BlockSpec((None, Cin, Mp), lambda n: (n, 0, 0)),   # per-image input block
            ],
            out_specs=pl.BlockSpec((None, Cout, Mp), lambda n: (n, 0, 0)),
        ),
        compiler_params=pltpu.CompilerParams(
            dimension_semantics=("parallel",),
            vmem_limit_bytes=vmem_limit,
        ),
        cost_estimate=cost,
    )(w_fold, shift, masks, x_flat)

    if Mp != M:
        out = out[:, :, :M]
    return out.reshape(N, Cout, H, W)         # free: output is already (N, Cout, H*W)


def conv_block_reference(x, w, b, gamma, beta, rm, rv, eps=1e-5):
    # Pure-JAX reference of the same eval-mode forward.
    y = lax.conv_general_dilated(
        x, w, window_strides=(1, 1), padding=((1, 1), (1, 1)),
        dimension_numbers=("NCHW", "OIHW", "NCHW"),
        precision=lax.Precision.HIGHEST,
    )
    y = y + b.reshape(1, -1, 1, 1)
    y = (y - rm.reshape(1, -1, 1, 1)) / jnp.sqrt(rv.reshape(1, -1, 1, 1) + eps)
    y = y * gamma.reshape(1, -1, 1, 1) + beta.reshape(1, -1, 1, 1)
    return jnp.maximum(y, 0.0)


if __name__ == "__main__":
    # Small shapes consistent with conv_block(in_c=4, out_c=8) on a 2x4x16x16 input.
    N, Cin, Cout, H, W = 2, 4, 8, 16, 16

    key = jax.random.PRNGKey(0)
    k_x, k_w, k_b, k_g, k_be, k_m, k_v = jax.random.split(key, 7)

    x = jax.random.normal(k_x, (N, Cin, H, W), dtype=jnp.float32)
    # Conv2d params: weight (out_c, in_c, 3, 3), bias (out_c,)
    w = jax.random.normal(k_w, (Cout, Cin, 3, 3), dtype=jnp.float32) * 0.1
    b = jax.random.normal(k_b, (Cout,), dtype=jnp.float32) * 0.1
    # BatchNorm2d params: weight/bias and running mean/var, all (out_c,)
    gamma = 1.0 + 0.1 * jax.random.normal(k_g, (Cout,), dtype=jnp.float32)
    beta = 0.1 * jax.random.normal(k_be, (Cout,), dtype=jnp.float32)
    run_mean = 0.1 * jax.random.normal(k_m, (Cout,), dtype=jnp.float32)
    run_var = 1.0 + 0.1 * jax.nn.softplus(jax.random.normal(k_v, (Cout,), dtype=jnp.float32))

    ref = conv_block_reference(x, w, b, gamma, beta, run_mean, run_var)

    # Default (bf16 MXU operands, f32 accumulation + f32 epilogue) -- loose check.
    out_bf16 = jax.block_until_ready(
        conv_block_forward(x, w, b, gamma, beta, run_mean, run_var))
    assert out_bf16.shape == (N, Cout, H, W), out_bf16.shape
    assert jnp.allclose(out_bf16, ref, atol=5e-2, rtol=5e-2), \
        float(jnp.max(jnp.abs(out_bf16 - ref)))

    # f32 operands -- tight check.
    out_f32 = jax.block_until_ready(
        conv_block_forward(x, w, b, gamma, beta, run_mean, run_var,
                           compute_dtype=jnp.float32))
    assert out_f32.shape == (N, Cout, H, W), out_f32.shape
    assert jnp.allclose(out_f32, ref, atol=5e-3, rtol=5e-3), \
        float(jnp.max(jnp.abs(out_f32 - ref)))

    print("KERNEL_OK")
</pallas_src>

<mosaic_0001>
module attributes {stable_mosaic.version = 11 : i64} {
  func.func @conv_block_kernel(%arg0: i32, %arg1: memref<9x8x4xbf16, #tpu.memory_space<vmem>>, %arg2: memref<8x1xf32, #tpu.memory_space<vmem>>, %arg3: memref<9x1x256xf32, #tpu.memory_space<vmem>>, %arg4: memref<1x4x256xf32, #tpu.memory_space<vmem>>, %arg5: memref<1x8x256xf32, #tpu.memory_space<vmem>>) attributes {dimension_semantics = [#tpu.dimension_semantics<parallel>], iteration_bounds = array<i64: 2>, scalar_prefetch = 0 : i64, scratch_operands = 0 : i64, tpu.core_type = #tpu.core_type<tc>, window_params = [{pipeline_mode = #tpu.pipeline_mode<synchronous>, transform_indices = @transform_0, window_bounds = array<i64: 9, 8, 4>}, {pipeline_mode = #tpu.pipeline_mode<synchronous>, transform_indices = @transform_1, window_bounds = array<i64: 8, 1>}, {pipeline_mode = #tpu.pipeline_mode<synchronous>, transform_indices = @transform_2, window_bounds = array<i64: 9, 1, 256>}, {transform_indices = @transform_3, window_bounds = array<i64: 1, 4, 256>}, {transform_indices = @transform_4, window_bounds = array<i64: 1, 8, 256>}]} {
    %c0 = arith.constant 0 : index
    %c0_0 = arith.constant 0 : index
    %c0_1 = arith.constant 0 : index
    %0 = vector.load %arg4[%c0, %c0_0, %c0_1] : memref<1x4x256xf32, #tpu.memory_space<vmem>>, vector<1x4x256xf32>
    %1 = vector.shape_cast %0 : vector<1x4x256xf32> to vector<4x256xf32>
    %cst = arith.constant 0.000000e+00 : f32
    %2 = vector.broadcast %cst : f32 to vector<8x256xf32>
    %c17_i32 = arith.constant 17 : i32
    %3 = tpu.dynamic_rotate %1 by %c17_i32 dim 1 : vector<4x256xf32>, i32 -> vector<4x256xf32>
    %c0_2 = arith.constant 0 : index
    %c0_3 = arith.constant 0 : index
    %c0_4 = arith.constant 0 : index
    %4 = vector.load %arg3[%c0_2, %c0_3, %c0_4] : memref<9x1x256xf32, #tpu.memory_space<vmem>>, vector<1x1x256xf32>
    %5 = vector.shape_cast %4 : vector<1x1x256xf32> to vector<1x256xf32>
    %6 = vector.broadcast %5 : vector<1x256xf32> to vector<4x256xf32>
    %7 = arith.mulf %3, %6 : vector<4x256xf32>
    %c0_5 = arith.constant 0 : index
    %c0_6 = arith.constant 0 : index
    %c0_7 = arith.constant 0 : index
    %8 = vector.load %arg1[%c0_5, %c0_6, %c0_7] : memref<9x8x4xbf16, #tpu.memory_space<vmem>>, vector<1x8x4xbf16>
    %9 = vector.shape_cast %8 : vector<1x8x4xbf16> to vector<8x4xbf16>
    %10 = arith.truncf %7 : vector<4x256xf32> to vector<4x256xbf16>
    %cst_8 = arith.constant dense<0.000000e+00> : vector<8x256xf32>
    %11 = tpu.matmul %9, %10, %cst_8 {dimension_numbers = #tpu.dot_dimension_numbers<[1], [0], [0], [1], [0, 0, 1, 1], [], []>} : vector<8x4xbf16>, vector<4x256xbf16>, vector<8x256xf32> -> vector<8x256xf32>
    %12 = arith.addf %2, %11 : vector<8x256xf32>
    %c16_i32 = arith.constant 16 : i32
    %13 = tpu.dynamic_rotate %1 by %c16_i32 dim 1 : vector<4x256xf32>, i32 -> vector<4x256xf32>
    %c1 = arith.constant 1 : index
    %c0_9 = arith.constant 0 : index
    %c0_10 = arith.constant 0 : index
    %14 = vector.load %arg3[%c1, %c0_9, %c0_10] : memref<9x1x256xf32, #tpu.memory_space<vmem>>, vector<1x1x256xf32>
    %15 = vector.shape_cast %14 : vector<1x1x256xf32> to vector<1x256xf32>
    %16 = vector.broadcast %15 : vector<1x256xf32> to vector<4x256xf32>
    %17 = arith.mulf %13, %16 : vector<4x256xf32>
    %c1_11 = arith.constant 1 : index
    %c0_12 = arith.constant 0 : index
    %c0_13 = arith.constant 0 : index
    %18 = vector.load %arg1[%c1_11, %c0_12, %c0_13] : memref<9x8x4xbf16, #tpu.memory_space<vmem>>, vector<1x8x4xbf16>
    %19 = vector.shape_cast %18 : vector<1x8x4xbf16> to vector<8x4xbf16>
    %20 = arith.truncf %17 : vector<4x256xf32> to vector<4x256xbf16>
    %cst_14 = arith.constant dense<0.000000e+00> : vector<8x256xf32>
    %21 = tpu.matmul %19, %20, %cst_14 {dimension_numbers = #tpu.dot_dimension_numbers<[1], [0], [0], [1], [0, 0, 1, 1], [], []>} : vector<8x4xbf16>, vector<4x256xbf16>, vector<8x256xf32> -> vector<8x256xf32>
    %22 = arith.addf %12, %21 : vector<8x256xf32>
    %c15_i32 = arith.constant 15 : i32
    %23 = tpu.dynamic_rotate %1 by %c15_i32 dim 1 : vector<4x256xf32>, i32 -> vector<4x256xf32>
    %c2 = arith.constant 2 : index
    %c0_15 = arith.constant 0 : index
    %c0_16 = arith.constant 0 : index
    %24 = vector.load %arg3[%c2, %c0_15, %c0_16] : memref<9x1x256xf32, #tpu.memory_space<vmem>>, vector<1x1x256xf32>
    %25 = vector.shape_cast %24 : vector<1x1x256xf32> to vector<1x256xf32>
    %26 = vector.broadcast %25 : vector<1x256xf32> to vector<4x256xf32>
    %27 = arith.mulf %23, %26 : vector<4x256xf32>
    %c2_17 = arith.constant 2 : index
    %c0_18 = arith.constant 0 : index
    %c0_19 = arith.constant 0 : index
    %28 = vector.load %arg1[%c2_17, %c0_18, %c0_19] : memref<9x8x4xbf16, #tpu.memory_space<vmem>>, vector<1x8x4xbf16>
    %29 = vector.shape_cast %28 : vector<1x8x4xbf16> to vector<8x4xbf16>
    %30 = arith.truncf %27 : vector<4x256xf32> to vector<4x256xbf16>
    %cst_20 = arith.constant dense<0.000000e+00> : vector<8x256xf32>
    %31 = tpu.matmul %29, %30, %cst_20 {dimension_numbers = #tpu.dot_dimension_numbers<[1], [0], [0], [1], [0, 0, 1, 1], [], []>} : vector<8x4xbf16>, vector<4x256xbf16>, vector<8x256xf32> -> vector<8x256xf32>
    %32 = arith.addf %22, %31 : vector<8x256xf32>
    %c1_i32 = arith.constant 1 : i32
    %33 = tpu.dynamic_rotate %1 by %c1_i32 dim 1 : vector<4x256xf32>, i32 -> vector<4x256xf32>
    %c3 = arith.constant 3 : index
    %c0_21 = arith.constant 0 : index
    %c0_22 = arith.constant 0 : index
    %34 = vector.load %arg3[%c3, %c0_21, %c0_22] : memref<9x1x256xf32, #tpu.memory_space<vmem>>, vector<1x1x256xf32>
    %35 = vector.shape_cast %34 : vector<1x1x256xf32> to vector<1x256xf32>
    %36 = vector.broadcast %35 : vector<1x256xf32> to vector<4x256xf32>
    %37 = arith.mulf %33, %36 : vector<4x256xf32>
    %c3_23 = arith.constant 3 : index
    %c0_24 = arith.constant 0 : index
    %c0_25 = arith.constant 0 : index
    %38 = vector.load %arg1[%c3_23, %c0_24, %c0_25] : memref<9x8x4xbf16, #tpu.memory_space<vmem>>, vector<1x8x4xbf16>
    %39 = vector.shape_cast %38 : vector<1x8x4xbf16> to vector<8x4xbf16>
    %40 = arith.truncf %37 : vector<4x256xf32> to vector<4x256xbf16>
    %cst_26 = arith.constant dense<0.000000e+00> : vector<8x256xf32>
    %41 = tpu.matmul %39, %40, %cst_26 {dimension_numbers = #tpu.dot_dimension_numbers<[1], [0], [0], [1], [0, 0, 1, 1], [], []>} : vector<8x4xbf16>, vector<4x256xbf16>, vector<8x256xf32> -> vector<8x256xf32>
    %42 = arith.addf %32, %41 : vector<8x256xf32>
    %c4 = arith.constant 4 : index
    %c0_27 = arith.constant 0 : index
    %c0_28 = arith.constant 0 : index
    %43 = vector.load %arg1[%c4, %c0_27, %c0_28] : memref<9x8x4xbf16, #tpu.memory_space<vmem>>, vector<1x8x4xbf16>
    %44 = vector.shape_cast %43 : vector<1x8x4xbf16> to vector<8x4xbf16>
    %45 = arith.truncf %1 : vector<4x256xf32> to vector<4x256xbf16>
    %cst_29 = arith.constant dense<0.000000e+00> : vector<8x256xf32>
    %46 = tpu.matmul %44, %45, %cst_29 {dimension_numbers = #tpu.dot_dimension_numbers<[1], [0], [0], [1], [0, 0, 1, 1], [], []>} : vector<8x4xbf16>, vector<4x256xbf16>, vector<8x256xf32> -> vector<8x256xf32>
    %47 = arith.addf %42, %46 : vector<8x256xf32>
    %c255_i32 = arith.constant 255 : i32
    %48 = tpu.dynamic_rotate %1 by %c255_i32 dim 1 : vector<4x256xf32>, i32 -> vector<4x256xf32>
    %c5 = arith.constant 5 : index
    %c0_30 = arith.constant 0 : index
    %c0_31 = arith.constant 0 : index
    %49 = vector.load %arg3[%c5, %c0_30, %c0_31] : memref<9x1x256xf32, #tpu.memory_space<vmem>>, vector<1x1x256xf32>
    %50 = vector.shape_cast %49 : vector<1x1x256xf32> to vector<1x256xf32>
    %51 = vector.broadcast %50 : vector<1x256xf32> to vector<4x256xf32>
    %52 = arith.mulf %48, %51 : vector<4x256xf32>
    %c5_32 = arith.constant 5 : index
    %c0_33 = arith.constant 0 : index
    %c0_34 = arith.constant 0 : index
    %53 = vector.load %arg1[%c5_32, %c0_33, %c0_34] : memref<9x8x4xbf16, #tpu.memory_space<vmem>>, vector<1x8x4xbf16>
    %54 = vector.shape_cast %53 : vector<1x8x4xbf16> to vector<8x4xbf16>
    %55 = arith.truncf %52 : vector<4x256xf32> to vector<4x256xbf16>
    %cst_35 = arith.constant dense<0.000000e+00> : vector<8x256xf32>
    %56 = tpu.matmul %54, %55, %cst_35 {dimension_numbers = #tpu.dot_dimension_numbers<[1], [0], [0], [1], [0, 0, 1, 1], [], []>} : vector<8x4xbf16>, vector<4x256xbf16>, vector<8x256xf32> -> vector<8x256xf32>
    %57 = arith.addf %47, %56 : vector<8x256xf32>
    %c241_i32 = arith.constant 241 : i32
    %58 = tpu.dynamic_rotate %1 by %c241_i32 dim 1 : vector<4x256xf32>, i32 -> vector<4x256xf32>
    %c6 = arith.constant 6 : index
    %c0_36 = arith.constant 0 : index
    %c0_37 = arith.constant 0 : index
    %59 = vector.load %arg3[%c6, %c0_36, %c0_37] : memref<9x1x256xf32, #tpu.memory_space<vmem>>, vector<1x1x256xf32>
    %60 = vector.shape_cast %59 : vector<1x1x256xf32> to vector<1x256xf32>
    %61 = vector.broadcast %60 : vector<1x256xf32> to vector<4x256xf32>
    %62 = arith.mulf %58, %61 : vector<4x256xf32>
    %c6_38 = arith.constant 6 : index
    %c0_39 = arith.constant 0 : index
    %c0_40 = arith.constant 0 : index
    %63 = vector.load %arg1[%c6_38, %c0_39, %c0_40] : memref<9x8x4xbf16, #tpu.memory_space<vmem>>, vector<1x8x4xbf16>
    %64 = vector.shape_cast %63 : vector<1x8x4xbf16> to vector<8x4xbf16>
    %65 = arith.truncf %62 : vector<4x256xf32> to vector<4x256xbf16>
    %cst_41 = arith.constant dense<0.000000e+00> : vector<8x256xf32>
    %66 = tpu.matmul %64, %65, %cst_41 {dimension_numbers = #tpu.dot_dimension_numbers<[1], [0], [0], [1], [0, 0, 1, 1], [], []>} : vector<8x4xbf16>, vector<4x256xbf16>, vector<8x256xf32> -> vector<8x256xf32>
    %67 = arith.addf %57, %66 : vector<8x256xf32>
    %c240_i32 = arith.constant 240 : i32
    %68 = tpu.dynamic_rotate %1 by %c240_i32 dim 1 : vector<4x256xf32>, i32 -> vector<4x256xf32>
    %c7 = arith.constant 7 : index
    %c0_42 = arith.constant 0 : index
    %c0_43 = arith.constant 0 : index
    %69 = vector.load %arg3[%c7, %c0_42, %c0_43] : memref<9x1x256xf32, #tpu.memory_space<vmem>>, vector<1x1x256xf32>
    %70 = vector.shape_cast %69 : vector<1x1x256xf32> to vector<1x256xf32>
    %71 = vector.broadcast %70 : vector<1x256xf32> to vector<4x256xf32>
    %72 = arith.mulf %68, %71 : vector<4x256xf32>
    %c7_44 = arith.constant 7 : index
    %c0_45 = arith.constant 0 : index
    %c0_46 = arith.constant 0 : index
    %73 = vector.load %arg1[%c7_44, %c0_45, %c0_46] : memref<9x8x4xbf16, #tpu.memory_space<vmem>>, vector<1x8x4xbf16>
    %74 = vector.shape_cast %73 : vector<1x8x4xbf16> to vector<8x4xbf16>
    %75 = arith.truncf %72 : vector<4x256xf32> to vector<4x256xbf16>
    %cst_47 = arith.constant dense<0.000000e+00> : vector<8x256xf32>
    %76 = tpu.matmul %74, %75, %cst_47 {dimension_numbers = #tpu.dot_dimension_numbers<[1], [0], [0], [1], [0, 0, 1, 1], [], []>} : vector<8x4xbf16>, vector<4x256xbf16>, vector<8x256xf32> -> vector<8x256xf32>
    %77 = arith.addf %67, %76 : vector<8x256xf32>
    %c239_i32 = arith.constant 239 : i32
    %78 = tpu.dynamic_rotate %1 by %c239_i32 dim 1 : vector<4x256xf32>, i32 -> vector<4x256xf32>
    %c8 = arith.constant 8 : index
    %c0_48 = arith.constant 0 : index
    %c0_49 = arith.constant 0 : index
    %79 = vector.load %arg3[%c8, %c0_48, %c0_49] : memref<9x1x256xf32, #tpu.memory_space<vmem>>, vector<1x1x256xf32>
    %80 = vector.shape_cast %79 : vector<1x1x256xf32> to vector<1x256xf32>
    %81 = vector.broadcast %80 : vector<1x256xf32> to vector<4x256xf32>
    %82 = arith.mulf %78, %81 : vector<4x256xf32>
    %c8_50 = arith.constant 8 : index
    %c0_51 = arith.constant 0 : index
    %c0_52 = arith.constant 0 : index
    %83 = vector.load %arg1[%c8_50, %c0_51, %c0_52] : memref<9x8x4xbf16, #tpu.memory_space<vmem>>, vector<1x8x4xbf16>
    %84 = vector.shape_cast %83 : vector<1x8x4xbf16> to vector<8x4xbf16>
    %85 = arith.truncf %82 : vector<4x256xf32> to vector<4x256xbf16>
    %cst_53 = arith.constant dense<0.000000e+00> : vector<8x256xf32>
    %86 = tpu.matmul %84, %85, %cst_53 {dimension_numbers = #tpu.dot_dimension_numbers<[1], [0], [0], [1], [0, 0, 1, 1], [], []>} : vector<8x4xbf16>, vector<4x256xbf16>, vector<8x256xf32> -> vector<8x256xf32>
    %87 = arith.addf %77, %86 : vector<8x256xf32>
    %c0_54 = arith.constant 0 : index
    %c0_55 = arith.constant 0 : index
    %88 = vector.load %arg2[%c0_54, %c0_55] : memref<8x1xf32, #tpu.memory_space<vmem>>, vector<8x1xf32>
    %89 = vector.broadcast %88 : vector<8x1xf32> to vector<8x256xf32>
    %90 = arith.addf %87, %89 : vector<8x256xf32>
    %cst_56 = arith.constant 0.000000e+00 : f32
    %91 = vector.broadcast %cst_56 : f32 to vector<8x256xf32>
    %92 = arith.maximumf %90, %91 : vector<8x256xf32>
    %c0_57 = arith.constant 0 : index
    %c0_58 = arith.constant 0 : index
    %c0_59 = arith.constant 0 : index
    %93 = vector.load %arg5[%c0_57, %c0_58, %c0_59] : memref<1x8x256xf32, #tpu.memory_space<vmem>>, vector<1x8x256xf32>
    %94 = vector.shape_cast %93 : vector<1x8x256xf32> to vector<8x256xf32>
    %95 = vector.shape_cast %92 : vector<8x256xf32> to vector<1x8x256xf32>
    tpu.vector_store %arg5[%c0_57, %c0_58, %c0_59], %95 {strides = array<i32>} : memref<1x8x256xf32, #tpu.memory_space<vmem>>, vector<1x8x256xf32>,
    return
  }
  func.func @transform_0(%arg0: i32) -> (i32, i32, i32) {
    %c0_i32 = arith.constant 0 : i32
    %c0_i32_0 = arith.constant 0 : i32
    %c0_i32_1 = arith.constant 0 : i32
    %c0_i32_2 = arith.constant 0 : i32
    return %c0_i32, %c0_i32_0, %c0_i32_1 : i32, i32, i32
  }
  func.func @transform_1(%arg0: i32) -> (i32, i32) {
    %c0_i32 = arith.constant 0 : i32
    %c0_i32_0 = arith.constant 0 : i32
    %c0_i32_1 = arith.constant 0 : i32
    return %c0_i32, %c0_i32_0 : i32, i32
  }
  func.func @transform_2(%arg0: i32) -> (i32, i32, i32) {
    %c0_i32 = arith.constant 0 : i32
    %c0_i32_0 = arith.constant 0 : i32
    %c0_i32_1 = arith.constant 0 : i32
    %c0_i32_2 = arith.constant 0 : i32
    return %c0_i32, %c0_i32_0, %c0_i32_1 : i32, i32, i32
  }
  func.func @transform_3(%arg0: i32) -> (i32, i32, i32) {
    %c0_i32 = arith.constant 0 : i32
    %c0_i32_0 = arith.constant 0 : i32
    %c0_i32_1 = arith.constant 0 : i32
    return %arg0, %c0_i32, %c0_i32_0 : i32, i32, i32
  }
  func.func @transform_4(%arg0: i32) -> (i32, i32, i32) {
    %c0_i32 = arith.constant 0 : i32
    %c0_i32_0 = arith.constant 0 : i32
    %c0_i32_1 = arith.constant 0 : i32
    return %arg0, %c0_i32, %c0_i32_0 : i32, i32, i32
  }
}

</mosaic_0001>

<bundles_post_ra>
// kernel: tpu_custom_call.1
= control target key start
LH: loop header
LB: loop body
LE: loop exit
PB: predicated region body
PF: predicated region fallthrough
CT: control target
= control target key end

     0   :  { %9 = vsyncpa [#allocation3], 0  ;;  %s1428_s0 = inlined_call_operand.vmem [shape: bf16[9,8,4], index: 0, kind: input, shape index: {}]   ;;  %s1429_s1 = inlined_call_operand.vmem [shape: f32[8,1], index: 1, kind: input, shape index: {}]   ;;  %s1430_s2 = inlined_call_operand.vmem [shape: f32[9,1,256], index: 2, kind: input, shape index: {}]   ;;  %s1431_s3 = inlined_call_operand.vmem [shape: f32[2,4,256], index: 3, kind: input, shape index: {}]   ;;  %s1432_s4 = inlined_call_operand.hbm [shape: f32[2,8,256], index: 4, kind: output, shape index: {}]  }
   0x1   :  { %11 = vsyncpa [#allocation3 + $0x1], 0  ;;  %s1161_s15 = smov 0   ;;  %s1163_s16 = smov 0  }
   0x2   :  { %s1165_s17 = smov 0   ;;  %s1167_s18 = smov 0  }
   0x3 LB: > { %s1182_s19 = sadd.s32 4294967295, %s1124_s18   ;;  %s965_s20 = sadd.s32 4294967294, %s1124_s18   ;;  %s1124_s18 = sphi %s1167_s18, %s1438_s18   ;;  %s1120_s17 = sphi %s1165_s17, %s1437_s17   ;;  %s1116_s16 = sphi %s1163_s16, %s1436_s16   ;;  %s1112_s15 = sphi %s1161_s15, %s1435_s15  }
   0x4   : > { %s1186_s21 = sadd.s32 1, %s1124_s18   ;;  %s113_s22 = sadd.s32 1, %s1120_s17 }
   0x5   : > { %s110_s23 = ssub.s32 %s1124_s18, %s1186_s21  ;;  %p123_p0 = scmp.ne.s32.totalorder %s1120_s17, %s1116_s16 }
   0x6   : > { %p111_p1 = scmp.eq.s32.totalorder %s110_s23, 0  ;;  %p124_p2 = scmp.eq.s32.totalorder %s1182_s19, 1 }
   0x7   : > { %p129_p3 = scmp.ne.s32.totalorder %s1116_s16, %s1112_s15  ;;  %p130_p4 = scmp.eq.s32.totalorder %s965_s20, 1 }
   0x8   : > { %s1197_s24 = scalar_select %p111_p1, %s1120_s17, %s113_s22  }
   0x9   : > { %p1199_p5 = por %p124_p2, %p123_p0  ;;  %p1203_p6 = por %p130_p4, %p129_p3 }
   0xa   : > { %p968_p7 = scmp.ge.s32.totalorder %s1124_s18, 1  ;;  %p165_p8 = scmp.lt.s32.totalorder %s1124_s18, 3 }
   0xc   : > { %p166_p9 = pnand %p968_p7, %p165_p8 }
   0xd   : > { %p191_p10 = scmp.lt.s32.totalorder (!%p166_p9), %s1182_s19, 1  ;;  %v1126_v1 = vmov (!%p166_p9), 0   ;;  %s1127_s6 = smov (!%p166_p9), 17   ;;  %v879_v3 = vld [vmem:[%s1429_s1] sm:$0xff] (!%p166_p9)  ;;  %v205_v4 = vlaneseq (!%p166_p9)  ;;  %vm257_vm3 = vcmask (!%p166_p9), 1041408   ;;  %vm253_vm5 = vcmask (!%p166_p9), 31744  }
   0xe   : > { %169 = sbr.rel (%p166_p9) target bundleno = 419 (0x1a3), region = 36  ;;  %296 = vmatprep.mubr.bf16.mxu0 (!%p166_p9), %v1126_v1  ;;  %s1128_s7 = smov (!%p166_p9), 16   ;;  %346 = vmatprep.mubr.bf16.mxu1 (!%p166_p9), %v1126_v1  ;;  %v210_v9 = vld [vmem:[%s1430_s2] sm:$0x3] (!%p166_p9)  ;;  %v972_v10 = vld [vmem:[%s1430_s2 + $0x2] sm:$0x3] (!%p166_p9) }
   0xf   : > { %1060 = vset.pattern.permute.xlu0 (!%p166_p9), %v1126_v1  ;;  %s1129_s8 = smov (!%p166_p9), 15   ;;  %s1130_s9 = smov (!%p166_p9), 1   ;;  %v213_v5 = vshrl.u32 (!%p166_p9), %v205_v4, 7  ;;  %v1242_v6 = vand.u32 (!%p166_p9), 127, %v205_v4  ;;  %v978_v13 = vld [vmem:[%s1430_s2 + $0x4] sm:$0x3] (!%p166_p9) }
  0x10   : > { %s1131_s10 = smov (!%p166_p9), 127   ;;  %s1132_s11 = smov (!%p166_p9), 113   ;;  %v982_v30 = vld [vmem:[%s1430_s2 + $0x6] sm:$0x3] (!%p166_p9)  ;;  %v989_v45 = vld [vmem:[%s1430_s2 + $0xa] sm:$0x3] (!%p166_p9) }
  0x11   : > { %s1133_s12 = smov (!%p166_p9), 112   ;;  %s1134_s13 = smov (!%p166_p9), 111   ;;  %v1244_v7 = vsub.s32 (!%p166_p9), 0, %v213_v5  ;;  %v1246_v8 = vsub.s32 (!%p166_p9), 1, %v213_v5  ;;  %vm207_vm0 = vcmp.lt.s32.totalorder (!%p166_p9), %v1242_v6, 17  ;;  %vm231_vm1 = vcmp.lt.s32.totalorder (!%p166_p9), %v1242_v6, 16 }
  0x12   : > { %vm359_vm2 = vcmp.lt.s32.totalorder (!%p166_p9), %v1242_v6, 15  ;;  %vm437_vm4 = vcmp.lt.s32.totalorder (!%p166_p9), %v1242_v6, 1  ;;  %v224_v46 = vld [vmem:[%s1428_s0] sm:$0xf] (!%p166_p9)  ;;  %v973_v47 = vld [vmem:[%s1428_s0 + $0x4] sm:$0xf] (!%p166_p9) }
  0x13   : > { %v215_v14 = vrot.slane (!%p166_p9), %v210_v9, %v1244_v7  ;;  %v240_v15 = vrot.slane (!%p166_p9), %v972_v10, %v1244_v7  ;;  %v244_v16 = vrot.slane (!%p166_p9), %v972_v10, %v1246_v8  ;;  %v219_v17 = vrot.slane (!%p166_p9), %v210_v9, %v1246_v8  ;;  %v993_v60 = vld [vmem:[%s1430_s2 + $0xc] sm:$0x3] (!%p166_p9)  ;;  %s188_s22 = sand.u32 (!%p166_p9), 1, %s1116_s16  }
  0x14   : > { %v368_v20 = vrot.slane (!%p166_p9), %v978_v13, %v1244_v7  ;;  %v372_v21 = vrot.slane (!%p166_p9), %v978_v13, %v1246_v8  ;;  %v446_v39 = vrot.slane (!%p166_p9), %v982_v30, %v1244_v7  ;;  %v450_v40 = vrot.slane (!%p166_p9), %v982_v30, %v1246_v8  ;;  %v997_v13 = vld [vmem:[%s1430_s2 + $0xe] sm:$0x3] (!%p166_p9)  ;;  %s969_s23 = sshll.u32 (!%p166_p9), %s188_s22, 4 }
  0x15   : > { %s192_s27 = scalar_select %p191_p10, %s1182_s19, 1  ;;  %vm571_vm6 = vcmp.lt.s32.totalorder %v1242_v6, 127  ;;  %v580_v54 = vrot.slane %v989_v45, %v1244_v7  ;;  %v584_v59 = vrot.slane %v989_v45, %v1246_v8  ;;  %vm649_vm7 = vcmp.lt.s32.totalorder %v1242_v6, 113 }
  0x16   : > { %v658_v9 = vrot.slane %v993_v60, %v1244_v7  ;;  %vm727_vm8 = vcmp.lt.s32.totalorder %v1242_v6, 112  ;;  %vm805_vm9 = vcmp.lt.s32.totalorder %v1242_v6, 111 }
  0x17   : > { %s1010_s28 = sshll.u32 %s192_s27, 3  ;;  %s1011_s27 = sshll.u32 %s1182_s19, 8 }
  0x18   : > { %s195_s5 = scalar_lea.vmem %s1431_s3, %s1010_s28  ;;  %s190_s28 = scalar_lea.vmem [#allocation2], %s969_s23 }
  0x19   : > { %v1214_v0 = vld [vmem:[%s195_s5] sm:$0xff]  ;;  %s906_s29 = sshll.u32 %s190_s28, 4  ;;  %s1135_s19 = smov [#allocation2]   ;;  %s1388_s29 = int_to_ptr.vmem [resolvable:$true] %s906_s29 }
  0x1a   : > { %201 = vrot.lane.b32.xlu1 %v1214_v0, %s1127_s6  ;;  %227 = vrot.lane.b32.xlu0 %v1214_v0, %s1128_s7  ;;  %v1221_v2 = vcombine.high %v1214_v0, %v1214_v0 }
  0x1c   : > { %v514_v55 = vpack.c.bf16 %v1221_v2, %v1221_v2 }
  0x1e   : > { %203 = vrot.lane.b32.xlu1 %v1221_v2, %s1127_s6  ;;  %229 = vrot.lane.b32.xlu0 %v1221_v2, %s1128_s7  ;;  %s1386_s6 = scalar_lea.hbm %s1432_s4, %s1011_s27  ;;  %s892_s7 = scalar_lea.sflag [#allocation3], %s188_s22 }
  0x22   : > { %357 = vrot.lane.b32.xlu1 %v1221_v2, %s1129_s8  ;;  %355 = vrot.lane.b32.xlu0 %v1214_v0, %s1129_s8  ;;  %s1062_s8 = scalar_lea.vmem %s1388_s29, 256 }
  0x23   : > { %p1063_p11 = scmp.ne.s32.totalorder %s1388_s29, %s1062_s8 }
  0x25   : > { %p1064_p12 = pnand %p1063_p11, %p1199_p5 }
  0x26   : > { %435 = vrot.lane.b32.xlu1 %v1221_v2, %s1130_s9  ;;  %433 = vrot.lane.b32.xlu0 %v1214_v0, %s1130_s9  ;;  %s1066_s9 = sshll.u32 %s1135_s19, 4  ;;  %s1067_s9 = int_to_ptr.vmem [resolvable:$false] %s1066_s9 }
  0x27   : > { %p1065_p13 = pneg %p1064_p12  ;;  %p1069_p0 = scmp.lt.s32.totalorder %s1388_s29, %s1067_s9 }
  0x2a   : > { %569 = vrot.lane.b32.xlu1 %v1221_v2, %s1131_s10  ;;  %567 = vrot.lane.b32.xlu0 %v1214_v0, %s1131_s10  ;;  %s1068_s10 = scalar_lea.vmem %s1067_s9, 512 }
  0x2b   : > { %p1070_p1 = scmp.lt.s32.totalorder %s1068_s10, %s1062_s8 }
  0x2d   : > { %p1071_p2 = por %p1070_p1, %p1069_p0 }
  0x2e   : > { %647 = vrot.lane.b32.xlu1 %v1221_v2, %s1132_s11  ;;  %645 = vrot.lane.b32.xlu0 %v1214_v0, %s1132_s11 }
  0x2f   : > { %p1072_p3 = pnand %p1071_p2, %p1065_p13 }
  0x32   : > { %725 = vrot.lane.b32.xlu1 %v1221_v2, %s1133_s12  ;;  %723 = vrot.lane.b32.xlu0 %v1214_v0, %s1133_s12 }
  0x36   : > { %803 = vrot.lane.b32.xlu1 %v1221_v2, %s1134_s13  ;;  %801 = vrot.lane.b32.xlu0 %v1214_v0, %s1134_s13 }
  0x3a   : > { %882 = vperm.xlu0 %1060, %v879_v3   ;;  %v513_v3 = vpack.c.bf16 %v1214_v0, %v1214_v0  ;;  %v662_v0 = vrot.slane %v993_v60, %v1246_v8 }
  0x8c   : > { %v202_v11 = vpop.permute.xlu1 %201  ;;  %v228_v12 = vpop.permute.xlu0 %227 }
  0x90   : > { %v204_v18 = vpop.permute.xlu1 %203  ;;  %v230_v19 = vpop.permute.xlu0 %229 }
  0x91   : > { %v208_v22 = vsel %vm207_vm0, %v202_v11, %v204_v18  ;;  %v209_v23 = vsel %vm207_vm0, %v204_v18, %v202_v11  ;;  %v232_v24 = vsel %vm231_vm1, %v228_v12, %v230_v19  ;;  %v233_v25 = vsel %vm231_vm1, %v230_v19, %v228_v12 }
  0x92   : > { %v222_v26 = vmul.f32 %v215_v14, %v209_v23  ;;  %v247_v27 = vmul.f32 %v240_v15, %v233_v25  ;;  %v248_v28 = vmul.f32 %v244_v16, %v232_v24  ;;  %v223_v29 = vmul.f32 %v219_v17, %v208_v22  ;;  %v979_v14 = vld [vmem:[%s1428_s0 + $0x8] sm:$0xf]  ;;  %v983_v15 = vld [vmem:[%s1428_s0 + $0xc] sm:$0xf] }
  0x93   : > { %v519_v18 = vsel %vm257_vm3, %v513_v3, 0  ;;  %v736_v23 = vrot.slane %v997_v13, %v1244_v7 }
  0x94   : > { %v358_v31 = vpop.permute.xlu1 %357  ;;  %v356_v32 = vpop.permute.xlu0 %355  ;;  %v252_v33 = vpack.c.bf16 %v248_v28, %v248_v28  ;;  %v226_v34 = vpack.c.bf16 %v223_v29, %v223_v29  ;;  %v251_v35 = vpack.c.bf16 %v247_v27, %v247_v27  ;;  %v225_v36 = vpack.c.bf16 %v222_v26, %v222_v26  ;;  %v1001_v28 = vld [vmem:[%s1430_s2 + $0x10] sm:$0x3] }
  0x95   : > { %v360_v37 = vsel %vm359_vm2, %v356_v32, %v358_v31  ;;  %v361_v38 = vsel %vm359_vm2, %v358_v31, %v356_v32  ;;  %v740_v27 = vrot.slane %v997_v13, %v1246_v8 }
  0x96   : > { %v375_v41 = vmul.f32 %v368_v20, %v361_v38  ;;  %v376_v42 = vmul.f32 %v372_v21, %v360_v37  ;;  %974 = vmatprep.subr.msk.bf16.mxu0 %vm257_vm3, %v252_v33  ;;  %976 = vmatprep.subr.msk.bf16.mxu1 %vm257_vm3, %v226_v34  ;;  %v259_v43 = vsel %vm257_vm3, %v251_v35, 0  ;;  %v309_v44 = vsel %vm257_vm3, %v225_v36, 0 }
  0x97   : > { %265 = vmatpush1.bf16.msra.mxu0 %v259_v43  ;;  %315 = vmatpush1.bf16.msra.mxu1 %v309_v44  ;;  %v814_v37 = vrot.slane %v1001_v28, %v1244_v7  ;;  %v818_v38 = vrot.slane %v1001_v28, %v1246_v8 }
  0x98   : > { %v379_v48 = vpack.c.bf16 %v375_v41, %v375_v41  ;;  %v380_v49 = vpack.c.bf16 %v376_v42, %v376_v42  ;;  %v436_v50 = vpop.permute.xlu1 %435  ;;  %v434_v51 = vpop.permute.xlu0 %433 }
  0x99   : > { %v438_v52 = vsel %vm437_vm4, %v434_v51, %v436_v50  ;;  %v439_v53 = vsel %vm437_vm4, %v436_v50, %v434_v51  ;;  %v994_v50 = vld [vmem:[%s1428_s0 + $0x18] sm:$0xf]  ;;  %v998_v51 = vld [vmem:[%s1428_s0 + $0x1c] sm:$0xf] }
  0x9a   : > { %977 = vmatmul.mubr.msk.bf16.vlgmr.msra.gmra.mrb[0].mxu1 %vm253_vm5, %v224_v46  ;;  %975 = vmatmul.mubr.msk.bf16.vlgmr.msra.gmra.mrb[0].mxu0 %vm253_vm5, %v973_v47  ;;  %v453_v56 = vmul.f32 %v446_v39, %v439_v53  ;;  %v454_v57 = vmul.f32 %v450_v40, %v438_v52  ;;  %v385_v58 = vsel %vm257_vm3, %v379_v48, 0  ;;  %v986_v39 = vld [vmem:[%s1428_s0 + $0x10] sm:$0xf]  ;;  %v990_v40 = vld [vmem:[%s1428_s0 + $0x14] sm:$0xf] }
  0x9b   : > { %980 = vmatprep.subr.msk.bf16.mxu0 %vm257_vm3, %v380_v49  ;;  %422 = vmatprep.mubr.bf16.mxu0 %v1126_v1  ;;  %v1002_v53 = vld [vmem:[%s1428_s0 + $0x20] sm:$0xf] }
  0x9c   : > { %v457_v61 = vpack.c.bf16 %v453_v56, %v453_v56  ;;  %v458_v62 = vpack.c.bf16 %v454_v57, %v454_v57  ;;  %391 = vmatpush1.bf16.msra.mxu0 %v385_v58  ;;  %v570_v63 = vpop.permute.xlu1 %569  ;;  %v568_v2 = vpop.permute.xlu0 %567  ;;  %500 = vmatprep.mubr.bf16.mxu1 %v1126_v1 }
  0x9d   : > { %v572_v4 = vsel %vm571_vm6, %v568_v2, %v570_v63  ;;  %v573_v5 = vsel %vm571_vm6, %v570_v63, %v568_v2  ;;  %987 = vmatprep.subr.msk.bf16.mxu0 %vm257_vm3, %v514_v55 }
  0x9e   : > { %984 = vmatprep.subr.msk.bf16.mxu1 %vm257_vm3, %v458_v62  ;;  %v587_v10 = vmul.f32 %v580_v54, %v572_v4  ;;  %v588_v11 = vmul.f32 %v584_v59, %v573_v5  ;;  %v463_v12 = vsel %vm257_vm3, %v457_v61, 0 }
  0x9f   : > { %469 = vmatpush1.bf16.msra.mxu1 %v463_v12 }
  0xa0   : > { %v591_v16 = vpack.c.bf16 %v587_v10, %v587_v10  ;;  %v592_v17 = vpack.c.bf16 %v588_v11, %v588_v11  ;;  %v648_v19 = vpop.permute.xlu1 %647  ;;  %v646_v20 = vpop.permute.xlu0 %645 }
  0xa1   : > { %v650_v21 = vsel %vm649_vm7, %v646_v20, %v648_v19  ;;  %v651_v22 = vsel %vm649_vm7, %v648_v19, %v646_v20 }
  0xa2   : > { %981 = vmatmul.mubr.msk.bf16.vlgmr.msra.gmra.mrb[4].mxu0 %vm253_vm5, %v979_v14  ;;  %985 = vmatmul.mubr.msk.bf16.vlgmr.msra.gmra.mrb[4].mxu1 %vm253_vm5, %v983_v15  ;;  %v665_v24 = vmul.f32 %v658_v9, %v650_v21  ;;  %v666_v25 = vmul.f32 %v662_v0, %v651_v22  ;;  %v597_v26 = vsel %vm257_vm3, %v591_v16, 0 }
  0xa3   : > { %525 = vmatpush1.bf16.msra.mxu0 %v519_v18  ;;  %991 = vmatprep.subr.msk.bf16.mxu1 %vm257_vm3, %v592_v17 }
  0xa4   : > { %v669_v29 = vpack.c.bf16 %v665_v24, %v665_v24  ;;  %v670_v30 = vpack.c.bf16 %v666_v25, %v666_v25  ;;  %603 = vmatpush1.bf16.msra.mxu1 %v597_v26  ;;  %v726_v31 = vpop.permute.xlu1 %725  ;;  %v724_v32 = vpop.permute.xlu0 %723  ;;  %556 = vmatprep.mubr.bf16.mxu0 %v1126_v1 }
  0xa5   : > { %v728_v33 = vsel %vm727_vm8, %v724_v32, %v726_v31  ;;  %v729_v34 = vsel %vm727_vm8, %v726_v31, %v724_v32  ;;  %634 = vmatprep.mubr.bf16.mxu1 %v1126_v1 }
  0xa6   : > { %v743_v35 = vmul.f32 %v736_v23, %v728_v33  ;;  %v744_v36 = vmul.f32 %v740_v27, %v729_v34  ;;  %995 = vmatprep.subr.msk.bf16.mxu0 %vm257_vm3, %v670_v30  ;;  %v675_v6 = vsel %vm257_vm3, %v669_v29, 0 }
  0xa8   : > { %v747_v41 = vpack.c.bf16 %v743_v35, %v743_v35  ;;  %v748_v42 = vpack.c.bf16 %v744_v36, %v744_v36  ;;  %v804_v43 = vpop.permute.xlu1 %803  ;;  %v802_v44 = vpop.permute.xlu0 %801 }
  0xa9   : > { %v806_v45 = vsel %vm805_vm9, %v802_v44, %v804_v43  ;;  %v807_v46 = vsel %vm805_vm9, %v804_v43, %v802_v44 }
  0xaa   : > { %988 = vmatmul.mubr.msk.bf16.vlgmr.msra.gmra.mrb[8].mxu0 %vm253_vm5, %v986_v39  ;;  %992 = vmatmul.mubr.msk.bf16.vlgmr.msra.gmra.mrb[8].mxu1 %vm253_vm5, %v990_v40  ;;  %v821_v7 = vmul.f32 %v814_v37, %v806_v45  ;;  %v822_v8 = vmul.f32 %v818_v38, %v807_v46  ;;  %v753_v47 = vsel %vm257_vm3, %v747_v41, 0 }
  0xab   : > { %681 = vmatpush1.bf16.msra.mxu0 %v675_v6  ;;  %999 = vmatprep.subr.msk.bf16.mxu1 %vm257_vm3, %v748_v42 }
  0xac   : > { %v825_v48 = vpack.c.bf16 %v821_v7, %v821_v7  ;;  %v826_v49 = vpack.c.bf16 %v822_v8, %v822_v8  ;;  %759 = vmatpush1.bf16.msra.mxu1 %v753_v47  ;;  %712 = vmatprep.mubr.bf16.mxu0 %v1126_v1 }
  0xad   : > { %790 = vmatprep.mubr.bf16.mxu1 %v1126_v1 }
  0xae   : > { %1003 = vmatprep.subr.msk.bf16.mxu0 %vm257_vm3, %v826_v49  ;;  %v831_v52 = vsel %vm257_vm3, %v825_v48, 0 }
  0xb2   : > { %996 = vmatmul.mubr.msk.bf16.vlgmr.msra.gmra.mrb[12].mxu0 %vm253_vm5, %v994_v50  ;;  %1000 = vmatmul.mubr.msk.bf16.vlgmr.msra.gmra.mrb[12].mxu1 %vm253_vm5, %v998_v51 }
  0xb3   : > { %837 = vmatpush1.bf16.msra.mxu0 %v831_v52  ;;  %868 = vmatprep.mubr.bf16.mxu0 %v1126_v1 }
  0xb9   : > { %v883_v40 = vpop.permute.xlu0 %882 }
  0xba   : > { %1004 = vmatmul.mubr.msk.bf16.vlgmr.msra.gmra.mrb[16].mxu0 %vm253_vm5, %v1002_v53 }
 0x16d   : > { %v298_v54 = vpop.f32.mrb[0].mxu0  ;;  %v348_v55 = vpop.f32.mrb[0].mxu1 }
 0x16e   : > { %v349_v56 = vadd.f32 %v348_v55, %v298_v54  ;;  %v300_v57 = vpop.f32.mrb[1].mxu0  ;;  %v350_v58 = vpop.f32.mrb[1].mxu1 }
 0x16f   : > { %v351_v59 = vadd.f32 %v350_v58, %v300_v57  ;;  %v302_v60 = vpop.f32.mrb[2].mxu0  ;;  %v352_v61 = vpop.f32.mrb[2].mxu1 }
 0x170   : > { %v303_v62 = vpop.f32.mrb[3].mxu0  ;;  %v353_v63 = vpop.f32.mrb[3].mxu1 }
 0x175   : > { %v424_v2 = vpop.f32.mrb[4].mxu0  ;;  %v502_v3 = vpop.f32.mrb[4].mxu1 }
 0x176   : > { %v431_v4 = vadd.f32 %v424_v2, %v349_v56  ;;  %v426_v1 = vpop.f32.mrb[5].mxu0  ;;  %v504_v5 = vpop.f32.mrb[5].mxu1 }
 0x177   : > { %v432_v9 = vadd.f32 %v426_v1, %v351_v59  ;;  %v428_v10 = vpop.f32.mrb[6].mxu0  ;;  %v506_v11 = vpop.f32.mrb[6].mxu1 }
 0x178   : > { %v509_v12 = vadd.f32 %v502_v3, %v431_v4  ;;  %v429_v0 = vpop.f32.mrb[7].mxu0  ;;  %v507_v13 = vpop.f32.mrb[7].mxu1 }
 0x179   : > { %v510_v14 = vadd.f32 %v504_v5, %v432_v9 }
 0x17d   : > { %v558_v15 = vpop.f32.mrb[8].mxu0  ;;  %v636_v16 = vpop.f32.mrb[8].mxu1 }
 0x17e   : > { %v565_v17 = vadd.f32 %v558_v15, %v509_v12  ;;  %v560_v18 = vpop.f32.mrb[9].mxu0  ;;  %v638_v19 = vpop.f32.mrb[9].mxu1 }
 0x17f   : > { %v566_v20 = vadd.f32 %v560_v18, %v510_v14  ;;  %v562_v21 = vpop.f32.mrb[10].mxu0  ;;  %v640_v22 = vpop.f32.mrb[10].mxu1 }
 0x180   : > { %v643_v23 = vadd.f32 %v636_v16, %v565_v17  ;;  %v563_v24 = vpop.f32.mrb[11].mxu0  ;;  %v641_v25 = vpop.f32.mrb[11].mxu1 }
 0x181   : > { %v644_v26 = vadd.f32 %v638_v19, %v566_v20 }
 0x185   : > { %v714_v27 = vpop.f32.mrb[12].mxu0  ;;  %v792_v28 = vpop.f32.mrb[12].mxu1 }
 0x186   : > { %v721_v29 = vadd.f32 %v714_v27, %v643_v23  ;;  %v716_v30 = vpop.f32.mrb[13].mxu0  ;;  %v794_v31 = vpop.f32.mrb[13].mxu1 }
 0x187   : > { %v722_v32 = vadd.f32 %v716_v30, %v644_v26  ;;  %v718_v33 = vpop.f32.mrb[14].mxu0  ;;  %v796_v34 = vpop.f32.mrb[14].mxu1 }
 0x188   : > { %v799_v35 = vadd.f32 %v792_v28, %v721_v29  ;;  %v719_v36 = vpop.f32.mrb[15].mxu0  ;;  %v797_v37 = vpop.f32.mrb[15].mxu1 }
 0x189   : > { %v800_v38 = vadd.f32 %v794_v31, %v722_v32 }
 0x18d   : > { %v870_v39 = vpop.f32.mrb[16].mxu0 }
 0x18e   : > { %v877_v41 = vadd.f32 %v870_v39, %v799_v35  ;;  %v872_v42 = vpop.f32.mrb[17].mxu0 }
 0x18f   : > { %v878_v6 = vadd.f32 %v872_v42, %v800_v38  ;;  %v874_v43 = vpop.f32.mrb[18].mxu0 }
 0x190   : > { %v885_v44 = vadd.f32 %v883_v40, %v877_v41  ;;  %v875_v45 = vpop.f32.mrb[19].mxu0 }
 0x191   : > { %v886_v46 = vadd.f32 %v883_v40, %v878_v6 }
 0x192   : > { %v887_v7 = vmax.f32 %v885_v44, 0.0 }
 0x193   : > { %v888_v8 = vmax.f32 %v886_v46, 0.0 }
 0x194   : > { %889 = vst [vmem:[%s190_s28] sm:$0xff] %v887_v7 }
 0x195   : > { %890 = vst [vmem:[%s190_s28 + $0x8] sm:$0xff] %v888_v8 }
 0x196   : > { %1075 = shalt.err (!%p1072_p3)
}
 0x197   : > { %s1076_s11 = scalar_lea.hbm %s1386_s6, 256  ;;  %s1080_s14 = scalar_lea.hbm %s1432_s4, 512 }
 0x198   : > { %p1077_p4 = scmp.ne.s32.totalorder %s1386_s6, %s1076_s11  ;;  %p1081_p9 = scmp.lt.u32.totalorder %s1386_s6, %s1432_s4 }
 0x199   : > { %p1082_p10 = scmp.lt.u32.totalorder %s1080_s14, %s1076_s11  ;;  %p1084_p12 = scmp.lt.u32.totalorder %s1076_s11, %s1386_s6 }
 0x19a   : > { %p1078_p7 = pnand %p1077_p4, %p1199_p5 }
 0x19b   : > { %p1083_p11 = por %p1082_p10, %p1081_p9 }
 0x19c   : > { %p1079_p8 = pneg %p1078_p7 }
 0x19d   : > { %p1085_p13 = por %p1084_p12, %p1083_p11 }
 0x19f   : > { %p1086_p0 = pnand %p1085_p13, %p1079_p8 }
 0x1a1   : > { %1089 = shalt.err (!%p1086_p0)
}
 0x1a2   : > { %1012 = dma.vmem_to_hbm [thread:$0]  (%p1199_p5), %s1388_s29, 256, %s1386_s6, %s892_s7  }
 0x1a3 PF: > { %p1018_p1 = scmp.ge.s32.totalorder %s1124_s18, 2  ;;  %s918_s23 = sand.u32 1, %s1112_s15  }
 0x1a4   : > { %s919_s27 = scalar_lea.sflag [#allocation3], %s918_s23 }
 0x1a5   : > { %p1015_p2 = pnand %p1018_p1, %p1203_p6 }
 0x1a7   : > { %1107 = dma.done.wait (!%p1015_p2), %s919_s27, 256  }
 0x1a8   : > { %1109 = vsyncadd (!%p1015_p2), %s919_s27, 4294967040  ;;  %p14_p3 = scmp.ge.s32.totalorder %s1186_s21, 4   ;;  %s1435_s15 = smov %s1116_s16 }
 0x1a9   : > { %s1436_s16 = smov %s1120_s17  ;;  %s1437_s17 = smov %s1197_s24 }
 0x1aa   : > { %s1438_s18 = smov %s1186_s21  ;;  %16 = sbr.rel (!%p14_p3) target bundleno = 3 (0x3), region = 86 }
 0x1b1   :  { %924 = vsyncpa [#allocation3], 1 }
 0x1b2   :  { %926 = vsyncpa [#allocation3 + $0x1], 1 }

</bundles_post_ra>
